<compile_context>
chip_gen: v6e
topology: v6e:2x2x1
jax: 0.10.0
libtpu: 0.0.40
codegen_flags: <defaults>
</compile_context>

<pallas_src>
from dataclasses import dataclass

import jax
import jax.numpy as jnp
from jax.experimental import pallas as pl
from jax.experimental.pallas import tpu as pltpu


@dataclass
class DmiConfig:
    sequential_smoothing: float = 0.5


_NUM_CORES = 2          # leading "parallel" grid axis: v7x dual-TC split; 1-TC chips just loop it
_SUBLANE = 8
_PEEK_ROWS = 8          # minimum legal sublane block for the cross-tile boundary peek
_TILE_VMEM_BUDGET = 12 * 1024 * 1024    # double-buffered main-block budget (safe on v7x's 64 MiB VMEM)


def _seq_smoothing_kernel(x_ref, peek_ref, o_ref):
    """One (TM, D) row tile: sum of L2 norms of adjacent-row diffs, including
    the pair straddling this tile's upper boundary (via the peek block)."""
    c = pl.program_id(0)                       # core / megacore axis ("parallel")
    i = pl.program_id(1)                       # tile axis within a core ("arbitrary")
    tiles_per_core = pl.num_programs(1)
    g = c * tiles_per_core + i                 # global tile index
    num_tiles = pl.num_programs(0) * tiles_per_core

    @pl.when(i == 0)
    def _():
        o_ref[...] = jnp.zeros_like(o_ref)     # per-core accumulator init

    tm = x_ref.shape[0]

    # Stream the tile in its HBM dtype (bf16 stays bf16 on the wire); only the
    # diffs are promoted to f32.  Neighbour rows come from an XLU sublane
    # rotate instead of two materialized (TM-1, D) slice copies.
    x = x_ref[...]
    nxt = pltpu.roll(x, shift=tm - 1, axis=0)                 # row t -> neighbouring row
    d = (nxt - x).astype(jnp.float32)
    # Per-row lane reduce kept on the XLU: this kernel is HBM-bandwidth-bound,
    # so the MXU ones-matmul reduce is skipped per the feedback's own caveat.
    row_sq = jnp.sum(d * d, axis=-1, keepdims=True)           # (tm, 1)
    rolled_sum = jnp.sum(jnp.sqrt(row_sq), axis=0, keepdims=True)   # (1, 1)

    # The rotate wraps exactly one pair (first row <-> last row).  Its norm is
    # symmetric in the diff sign, so subtract it explicitly — direction-agnostic
    # and no per-row masking needed.
    x_first = x_ref[pl.ds(0, 1), :]
    x_last = x_ref[pl.ds(tm - 1, 1), :]
    wrap_d = (x_first - x_last).astype(jnp.float32)
    wrap_norm = jnp.sqrt(jnp.sum(wrap_d * wrap_d, axis=-1, keepdims=True))   # (1, 1)

    # Cross-tile boundary pair: last row of this tile vs first row of the next
    # tile (peek block).  Dropped for the very last tile (no next row).
    bdr_d = (peek_ref[pl.ds(0, 1), :] - x_last).astype(jnp.float32)
    bdr_norm = jnp.sqrt(jnp.sum(bdr_d * bdr_d, axis=-1, keepdims=True))      # (1, 1)
    bdr_norm = jnp.where(g == num_tiles - 1, jnp.zeros_like(bdr_norm), bdr_norm)

    o_ref[...] += (rolled_sum - wrap_norm + bdr_norm).reshape(1, 1, 1)


def _round_up(x, m):
    return ((x + m - 1) // m) * m


def _pick_tile_rows(T, D, itemsize, max_tile_rows):
    # Biggest multiple-of-8 row tile whose double-buffered (TM, D) block stays
    # inside the per-generation VMEM budget (re-derived per dtype / D).
    by_budget = _TILE_VMEM_BUDGET // (2 * max(D, 1) * itemsize)
    tm = max(_SUBLANE, (by_budget // _SUBLANE) * _SUBLANE)
    tm = min(tm, max(_SUBLANE, (max_tile_rows // _SUBLANE) * _SUBLANE))
    # No point making a tile larger than one core's share of rows.
    per_core = _round_up(pl.cdiv(T, _NUM_CORES), _SUBLANE)
    return max(_SUBLANE, min(tm, per_core))
    # TODO(synk): for extremely wide D (where even TM=8 busts the VMEM budget)
    # add an innermost "arbitrary" D grid axis accumulating per-row squared
    # sums into a (TM, 1) f32 scratch, with sqrt + row-sum at the last D block.


def sequential_smoothing(output: jax.Array, step: int, config: DmiConfig,
                         *, max_tile_rows: int = 512) -> jax.Array:
    """Pallas TPU implementation of SequentialSmoothing.forward for [T, D] input."""
    T, D = output.shape
    itemsize = jnp.dtype(output.dtype).itemsize
    tm = _pick_tile_rows(T, D, itemsize, max_tile_rows)
    tiles_per_core = pl.cdiv(T, _NUM_CORES * tm)
    t_pad = _NUM_CORES * tiles_per_core * tm
    if t_pad != T:
        # Edge-pad so every tile is full; duplicated rows contribute zero norms,
        # which exactly matches dropping the nonexistent pairs.
        output = jnp.pad(output, ((0, t_pad - T), (0, 0)), mode="edge")

    n_row_blocks = t_pad // _PEEK_ROWS
    blocks_per_tile = tm // _PEEK_ROWS

    def x_map(c, i):
        return (c * tiles_per_core + i, 0)

    def peek_map(c, i):
        g = c * tiles_per_core + i
        # First rows of the *next* tile; clamped on the final tile (masked in-kernel).
        return (jnp.minimum((g + 1) * blocks_per_tile, n_row_blocks - 1), 0)

    block_bytes = 2 * (tm + _PEEK_ROWS) * D * itemsize       # double-buffered inputs
    vmem_limit = int(min(32 * 1024 * 1024,
                         max(16 * 1024 * 1024, 2 * block_bytes + (1 << 20))))

    partials = pl.pallas_call(
        _seq_smoothing_kernel,
        out_shape=jax.ShapeDtypeStruct((_NUM_CORES, 1, 1), jnp.float32),
        grid_spec=pltpu.PrefetchScalarGridSpec(
            num_scalar_prefetch=0,
            grid=(_NUM_CORES, tiles_per_core),
            in_specs=[
                pl.BlockSpec((tm, D), x_map),                # streamed row tile
                pl.BlockSpec((_PEEK_ROWS, D), peek_map),     # boundary peek (next tile)
            ],
            out_specs=pl.BlockSpec((1, 1, 1), lambda c, i: (c, 0, 0)),
        ),
        compiler_params=pltpu.CompilerParams(
            dimension_semantics=("parallel", "arbitrary"),
            vmem_limit_bytes=vmem_limit,
        ),
        cost_estimate=pl.CostEstimate(
            flops=3 * t_pad * D + 2 * t_pad,
            transcendentals=t_pad,
            bytes_accessed=(t_pad + _NUM_CORES * tiles_per_core * _PEEK_ROWS) * D * itemsize
            + _NUM_CORES * 4,
        ),
    )(output, output)

    smoothness = jnp.sum(partials)
    scale = jnp.float32(config.sequential_smoothing) / jnp.float32(step + 1)
    return smoothness * scale


def _reference(output, step, config):
    d = (output[1:] - output[:-1]).astype(jnp.float32)
    smoothness = jnp.sum(jnp.sqrt(jnp.sum(d * d, axis=1)))
    return jnp.float32(config.sequential_smoothing) * smoothness / jnp.float32(step + 1)


if __name__ == "__main__":
    key = jax.random.PRNGKey(0)
    config = DmiConfig(sequential_smoothing=0.5)
    k1, k2 = jax.random.split(key)

    # Primary case from the module spec: seq=8, hidden=32.
    x1 = jax.random.normal(k1, (8, 32), dtype=jnp.float32)
    r1 = sequential_smoothing(x1, 3, config)
    jax.block_until_ready(r1)
    ref1 = _reference(x1, 3, config)
    assert jnp.allclose(r1, ref1, rtol=1e-5, atol=1e-5), (r1, ref1)

    # Exercise the multi-tile / padded / dual-core grid path (still small):
    # T=40 rows, D=96 lanes, forced TM=8 -> grid (2 cores, 3 tiles each).
    x2 = jax.random.normal(k2, (40, 96), dtype=jnp.float32)
    r2 = sequential_smoothing(x2, 0, config, max_tile_rows=8)
    jax.block_until_ready(r2)
    ref2 = _reference(x2, 0, config)
    assert jnp.allclose(r2, ref2, rtol=1e-5, atol=1e-5), (r2, ref2)

    print("KERNEL_OK")
</pallas_src>

<mosaic_0001>
module attributes {stable_mosaic.version = 11 : i64} {
  func.func @_seq_smoothing_kernel(%arg0: i32, %arg1: i32, %arg2: memref<8x32xf32, #tpu.memory_space<vmem>>, %arg3: memref<8x32xf32, #tpu.memory_space<vmem>>, %arg4: memref<1x1x1xf32, #tpu.memory_space<vmem>>) attributes {dimension_semantics = [#tpu.dimension_semantics<parallel>, #tpu.dimension_semantics<arbitrary>], iteration_bounds = array<i64: 2, 1>, scalar_prefetch = 0 : i64, scratch_operands = 0 : i64, tpu.core_type = #tpu.core_type<tc>, window_params = [{transform_indices = @transform_0, window_bounds = array<i64: 8, 32>}, {transform_indices = @transform_1, window_bounds = array<i64: 8, 32>}, {transform_indices = @transform_2, window_bounds = array<i64: 1, 1, 1>}]} {
    %c1_i32 = arith.constant 1 : i32
    %0 = arith.muli %arg0, %c1_i32 : i32
    %1 = arith.addi %0, %arg1 : i32
    %c0_i32 = arith.constant 0 : i32
    %2 = arith.cmpi eq, %arg1, %c0_i32 : i32
    %3 = arith.extui %2 : i1 to i32
    %c0_i32_0 = arith.constant 0 : i32
    %4 = arith.cmpi ne, %3, %c0_i32_0 : i32
    scf.if %4 {
      %cst_18 = arith.constant 0.000000e+00 : f32
      %36 = vector.broadcast %cst_18 : f32 to vector<1x1x1xf32>
      %c0_19 = arith.constant 0 : index
      %c0_20 = arith.constant 0 : index
      %c0_21 = arith.constant 0 : index
      %37 = vector.load %arg4[%c0_19, %c0_20, %c0_21] : memref<1x1x1xf32, #tpu.memory_space<vmem>>, vector<1x1x1xf32>
      tpu.vector_store %arg4[%c0_19, %c0_20, %c0_21], %36 {strides = array<i32>} : memref<1x1x1xf32, #tpu.memory_space<vmem>>, vector<1x1x1xf32>,
    } else {
    }
    %c0 = arith.constant 0 : index
    %c0_1 = arith.constant 0 : index
    %5 = vector.load %arg2[%c0, %c0_1] : memref<8x32xf32, #tpu.memory_space<vmem>>, vector<8x32xf32>
    %c7_i32 = arith.constant 7 : i32
    %6 = tpu.dynamic_rotate %5 by %c7_i32 dim 0 : vector<8x32xf32>, i32 -> vector<8x32xf32>
    %7 = arith.subf %6, %5 : vector<8x32xf32>
    %8 = arith.mulf %7, %7 : vector<8x32xf32>
    %cst = arith.constant dense<0.000000e+00> : vector<8xf32>
    %9 = vector.multi_reduction <add>, %8, %cst [1] : vector<8x32xf32> to vector<8xf32>
    %10 = vector.shape_cast %9 : vector<8xf32> to vector<8x1xf32>
    %11 = math.sqrt %10 : vector<8x1xf32>
    %cst_2 = arith.constant dense<0.000000e+00> : vector<1xf32>
    %12 = vector.multi_reduction <add>, %11, %cst_2 [0] : vector<8x1xf32> to vector<1xf32>
    %13 = vector.shape_cast %12 : vector<1xf32> to vector<1x1xf32>
    %c0_3 = arith.constant 0 : index
    %c0_4 = arith.constant 0 : index
    %14 = vector.load %arg2[%c0_3, %c0_4] : memref<8x32xf32, #tpu.memory_space<vmem>>, vector<1x32xf32>
    %c7 = arith.constant 7 : index
    %c0_5 = arith.constant 0 : index
    %15 = vector.load %arg2[%c7, %c0_5] : memref<8x32xf32, #tpu.memory_space<vmem>>, vector<1x32xf32>
    %16 = arith.subf %14, %15 : vector<1x32xf32>
    %17 = arith.mulf %16, %16 : vector<1x32xf32>
    %cst_6 = arith.constant dense<0.000000e+00> : vector<1xf32>
    %18 = vector.multi_reduction <add>, %17, %cst_6 [1] : vector<1x32xf32> to vector<1xf32>
    %19 = vector.shape_cast %18 : vector<1xf32> to vector<1x1xf32>
    %20 = math.sqrt %19 : vector<1x1xf32>
    %c0_7 = arith.constant 0 : index
    %c0_8 = arith.constant 0 : index
    %21 = vector.load %arg3[%c0_7, %c0_8] : memref<8x32xf32, #tpu.memory_space<vmem>>, vector<1x32xf32>
    %22 = arith.subf %21, %15 : vector<1x32xf32>
    %23 = arith.mulf %22, %22 : vector<1x32xf32>
    %cst_9 = arith.constant dense<0.000000e+00> : vector<1xf32>
    %24 = vector.multi_reduction <add>, %23, %cst_9 [1] : vector<1x32xf32> to vector<1xf32>
    %25 = vector.shape_cast %24 : vector<1xf32> to vector<1x1xf32>
    %26 = math.sqrt %25 : vector<1x1xf32>
    %c1_i32_10 = arith.constant 1 : i32
    %27 = arith.cmpi eq, %1, %c1_i32_10 : i32
    %cst_11 = arith.constant 0.000000e+00 : f32
    %28 = vector.broadcast %cst_11 : f32 to vector<1x1xf32>
    %29 = arith.select %27, %28, %26 : vector<1x1xf32>
    %c0_12 = arith.constant 0 : index
    %c0_13 = arith.constant 0 : index
    %c0_14 = arith.constant 0 : index
    %30 = vector.load %arg4[%c0_12, %c0_13, %c0_14] : memref<1x1x1xf32, #tpu.memory_space<vmem>>, vector<1x1x1xf32>
    %31 = arith.subf %13, %20 : vector<1x1xf32>
    %32 = arith.addf %31, %29 : vector<1x1xf32>
    %33 = vector.shape_cast %32 : vector<1x1xf32> to vector<1x1x1xf32>
    %34 = arith.addf %30, %33 : vector<1x1x1xf32>
    %c0_15 = arith.constant 0 : index
    %c0_16 = arith.constant 0 : index
    %c0_17 = arith.constant 0 : index
    %35 = vector.load %arg4[%c0_15, %c0_16, %c0_17] : memref<1x1x1xf32, #tpu.memory_space<vmem>>, vector<1x1x1xf32>
    tpu.vector_store %arg4[%c0_15, %c0_16, %c0_17], %34 {strides = array<i32>} : memref<1x1x1xf32, #tpu.memory_space<vmem>>, vector<1x1x1xf32>,
    return
  }
  func.func @transform_0(%arg0: i32, %arg1: i32) -> (i32, i32) {
    %c1_i32 = arith.constant 1 : i32
    %0 = arith.muli %arg0, %c1_i32 : i32
    %1 = arith.addi %0, %arg1 : i32
    %c0_i32 = arith.constant 0 : i32
    %c0_i32_0 = arith.constant 0 : i32
    return %1, %c0_i32 : i32, i32
  }
  func.func @transform_1(%arg0: i32, %arg1: i32) -> (i32, i32) {
    %c1_i32 = arith.constant 1 : i32
    %0 = arith.muli %arg0, %c1_i32 : i32
    %1 = arith.addi %0, %arg1 : i32
    %c1_i32_0 = arith.constant 1 : i32
    %2 = arith.addi %1, %c1_i32_0 : i32
    %c1_i32_1 = arith.constant 1 : i32
    %3 = arith.muli %2, %c1_i32_1 : i32
    %c1_i32_2 = arith.constant 1 : i32
    %4 = arith.minsi %3, %c1_i32_2 : i32
    %c0_i32 = arith.constant 0 : i32
    %c0_i32_3 = arith.constant 0 : i32
    return %4, %c0_i32 : i32, i32
  }
  func.func @transform_2(%arg0: i32, %arg1: i32) -> (i32, i32, i32) {
    %c0_i32 = arith.constant 0 : i32
    %c0_i32_0 = arith.constant 0 : i32
    %c0_i32_1 = arith.constant 0 : i32
    return %arg0, %c0_i32, %c0_i32_0 : i32, i32, i32
  }
}

</mosaic_0001>

<bundles_post_ra>
// kernel: tpu_custom_call.1
= control target key start
LH: loop header
LB: loop body
LE: loop exit
PB: predicated region body
PF: predicated region fallthrough
CT: control target
= control target key end

     0   :  { %7 = vsyncpa [#allocation3], 0  ;;  %s811_s0 = inlined_call_operand.hbm [shape: f32[16,32], index: 0, kind: input, shape index: {}]   ;;  %s812_s1 = inlined_call_operand.hbm [shape: f32[16,32], index: 1, kind: input, shape index: {}]   ;;  %s813_s2 = inlined_call_operand.vmem [shape: f32[2,1,1], index: 2, kind: output, shape index: {}]  }
   0x1   :  { %9 = vsyncpa [#allocation3 + $0x1], 0 }
   0x2   :  { %10 = vsyncpa [#allocation5], 0 }
   0x3   :  { %12 = vsyncpa [#allocation5 + $0x1], 0  ;;  %s640_s9 = smov 0   ;;  %s642_s10 = smov 0  }
   0x4   :  { %s644_s11 = smov 0   ;;  %s646_s12 = smov 0  }
   0x5   :  { %s648_s13 = smov 0   ;;  %s650_s14 = smov 0  }
   0x6   :  { %s652_s15 = smov 0   ;;  %s654_s16 = smov 0  }
   0x7 LB: > { %s384_s17 = sadd.s32 4294967295, %s620_s16   ;;  %s30_s18 = sadd.s32 1, %s616_s15  ;;  %s620_s16 = sphi %s654_s16, %s18_s16   ;;  %s616_s15 = sphi %s652_s15, %s833_s15   ;;  %s612_s14 = sphi %s650_s14, %s832_s14   ;;  %s608_s13 = sphi %s648_s13, %s831_s13   ;;  %s604_s12 = sphi %s646_s12, %s830_s12   ;;  %s600_s11 = sphi %s644_s11, %s829_s11   ;;  %s596_s10 = sphi %s642_s10, %s792_s10   ;;  %s592_s9 = sphi %s640_s9, %s828_s9  }
   0x8   : > { %p32_p0 = scmp.ge.s32.totalorder %s30_s18, 2  ;;  %s39_s19 = sadd.s32 1, %s608_s13 }
   0x9   : > { %p46_p1 = scmp.ne.s32.totalorder %s608_s13, %s604_s12  ;;  %p47_p2 = scmp.eq.s32.totalorder %s620_s16, 0 }
   0xa   : > { %s835_s18 = smov (%p32_p0, %s30_s18), 0  ;;  %p52_p4 = scmp.ne.s32.totalorder %s604_s12, %s600_s11 }
   0xb   : > { %p688_p3 = por %p47_p2, %p46_p1  ;;  %s36_s21 = ssub.s32 %s616_s15, %s835_s18 }
   0xc   : > { %p695_p5 = scmp.eq.s32.totalorder %s384_s17, 0  ;;  %p37_p6 = scmp.eq.s32.totalorder %s36_s21, 0 }
   0xd   : > { %p814_p8 = scmp.lt.s32.totalorder %s620_s16, 2  ;;  %s136_s25 = sand.u32 1, %s608_s13  }
   0xe   : > { %p701_p7 = por %p695_p5, %p52_p4  ;;  %s389_s26 = sshll.u32 %s616_s15, 7 }
   0xf   : > { %s707_s24 = scalar_select %p37_p6, %s608_s13, %s39_s19  }
  0x10   : > { %s819_s23 = scalar_select %p701_p7, 1, 0 }
  0x11   : > { %s388_s27 = sshll.u32 %s136_s25, 3  ;;  %s146_s30 = scalar_lea.hbm %s811_s0, %s389_s26 }
  0x12   : > { %s140_s3 = scalar_lea.vmem [#allocation2], %s388_s27  ;;  %p718_p9 = pnand %p814_p8, %p688_p3 }
  0x13   : > { %s148_s4 = sshll.u32 %s140_s3, 4  ;;  %p392_p10 = scmp.ge.s32.totalorder %s620_s16, 1  ;;  %s149_s4 = int_to_ptr.vmem [resolvable:$true] %s148_s4 }
  0x14   : > { %p175_p11 = scmp.lt.s32.totalorder %s620_s16, 3  ;;  %s137_s6 = scalar_lea.sflag [#allocation3], %s136_s25 }
  0x15   : > { %p490_p12 = pneg %p718_p9  ;;  %s501_s7 = scalar_lea.vmem %s149_s4, 128 }
  0x16   : > { %p502_p13 = scmp.ne.s32.totalorder %s149_s4, %s501_s7  ;;  %s622_s8 = smov [#allocation2]  }
  0x17   : > { %s506_s11 = sshll.u32 %s622_s8, 4  ;;  %s507_s11 = int_to_ptr.vmem [resolvable:$false] %s506_s11 }
  0x18   : > { %p504_p0 = pnand %p502_p13, %p490_p12  ;;  %s508_s17 = scalar_lea.vmem %s507_s11, 256 }
  0x19   : > { %p509_p4 = scmp.lt.s32.totalorder %s149_s4, %s507_s11  ;;  %p510_p3 = scmp.lt.s32.totalorder %s508_s17, %s501_s7 }
  0x1a   : > { %p505_p1 = pneg %p504_p0 }
  0x1b   : > { %p511_p6 = por %p510_p3, %p509_p4 }
  0x1d   : > { %p512_p8 = pnand %p511_p6, %p505_p1 }
  0x1f   : > { %515 = shalt.err (!%p512_p8)
}
  0x20   : > { %404 = dma.hbm_to_vmem [thread:$0]  (!%p718_p9), %s146_s30, 128, %s149_s4, %s137_s6  }
  0x21   : > { %p732_p12 = pnand %p392_p10, %p175_p11  ;;  %p589_p13 = scmp.ne.s32.totalorder %s596_s10, 0 }
  0x22   : > { %p86_p0 = scmp.ne.s32.totalorder %s596_s10, %s592_s9  ;;  %s168_s26 = scalar_lea.hbm %s812_s1, 128 }
  0x23   : > { %s821_s19 = scalar_select %p732_p12, 1, 0 }
  0x24   : > { %p82_p8 = por %p589_p13, %p47_p2  ;;  %p743_p1 = por %p86_p0, %p695_p5 }
  0x25   : > { %s623_s27 = smov [#allocation4]   ;;  %p823_p9 = scmp.lt.s32.totalorder %s620_s16, 2 }
  0x26   : > { %s822_s20 = scalar_select %p743_p1, 1, 0 }
  0x27   : > { %s170_s28 = sshll.u32 %s623_s27, 4  ;;  %p752_p10 = pnand %p823_p9, %p82_p8  ;;  %s171_s28 = int_to_ptr.vmem [resolvable:$true] %s170_s28 }
  0x28   : > { %s588_s22 = scalar_lea.hbm %s812_s1, 256 }
  0x29   : > { %p517_p2 = scmp.ne.s32.totalorder %s168_s26, %s588_s22  ;;  %p518_p5 = pneg %p752_p10 }
  0x2a   : > { %p523_p3 = scmp.lt.s32.totalorder %s588_s22, %s588_s22 }
  0x2b   : > { %p519_p11 = pnand %p518_p5, %p517_p2 }
  0x2d   : > { %p520_p4 = pneg %p519_p11 }
  0x2f   : > { %p525_p6 = pnand %p523_p3, %p520_p4 }
  0x31   : > { %528 = shalt.err (!%p525_p6)
}
  0x32   : > { %s529_s3 = scalar_lea.vmem %s171_s28, 128  ;;  %s536_s4 = scalar_lea.vmem %s171_s28, 256 }
  0x33   : > { %p530_p13 = scmp.ne.s32.totalorder %s171_s28, %s529_s3  ;;  %p537_p9 = scmp.lt.s32.totalorder %s171_s28, %s171_s28 }
  0x34   : > { %p538_p1 = scmp.lt.s32.totalorder %s536_s4, %s529_s3 }
  0x35   : > { %p532_p0 = pnand %p530_p13, %p518_p5 }
  0x36   : > { %p539_p7 = por %p538_p1, %p537_p9 }
  0x37   : > { %p533_p8 = pneg %p532_p0 }
  0x39   : > { %p540_p12 = pnand %p539_p7, %p533_p8 }
  0x3b   : > { %543 = shalt.err (!%p540_p12)
}
  0x3c   : > { %407 = dma.hbm_to_vmem [thread:$0]  (!%p752_p10), %s168_s26, 128, %s171_s28, [#allocation5]  }
  0x3d   : > { %p825_p2 = scmp.ne.s32.totalorder %s821_s19, 0 }
  0x3e   : > { %s181_s5 = sand.u32 (!%p825_p2), 1, %s604_s12   ;;  %p826_p5 = scmp.ne.s32.totalorder (!%p825_p2), %s819_s23, 0 }
  0x3f   : > { %179 = sbr.rel (%p825_p2) target bundleno = 257 (0x101), region = 28  ;;  %s393_s6 = sshll.u32 (!%p825_p2), %s181_s5, 3 }
  0x40   : > { %s182_s7 = scalar_lea.sflag (!%p825_p2), [#allocation3], %s181_s5  ;;  %s185_s8 = scalar_lea.vmem (!%p825_p2), [#allocation2], %s393_s6 }
  0x44   : > { %581 = dma.done.wait (%p826_p5), %s182_s7, 128  }
  0x45   : > { %583 = vsyncadd (%p826_p5), %s182_s7, 4294967168  ;;  %s190_s11 = sand.u32 1, %s596_s10   ;;  %p827_p7 = scmp.ne.s32.totalorder %s822_s20, 0 }
  0x46   : > { %s394_s17 = sshll.u32 %s190_s11, 3  ;;  %s191_s21 = scalar_lea.sflag [#allocation5], %s190_s11 }
  0x47   : > { %s194_s25 = scalar_lea.vmem [#allocation4], %s394_s17 }
  0x48   : > { %585 = dma.done.wait (%p827_p7), %s191_s21, 128  }
  0x49   : > { %587 = vsyncadd (%p827_p7), %s191_s21, 4294967168  ;;  %p223_p12 = scmp.lt.s32.totalorder %s612_s14, 1  ;;  %vm231_vm0 = vcmask 0   ;;  %v624_v0 = vmov 0.0   ;;  %v255_v1 = vld [vmem:[%s185_s8 + $0x7] sm:$0x1] }
  0x4a   : > { %v269_v2 = vld [vmem:[%s194_s25] sm:$0x1]  ;;  %v233_v3 = vld [vmem:[%s185_s8] sm:$0xff]  ;;  %vm258_vm1 = vcmask 253952   ;;  %vm237_vm2 = vcmask 261120   ;;  %p282_p1 = scmp.eq.s32.totalorder %s612_s14, 1 }
  0x4b   : > { %s224_s19 = scalar_select %p223_p12, %s612_s14, 1  ;;  %v270_v4 = vsub.f32 %v269_v2, %v255_v1  ;;  %v234_v5 = vrot.slane %v233_v3, 1  ;;  %v254_v6 = vld [vmem:[%s185_s8] sm:$0x1] }
  0x4c   : > { %v256_v7 = vsub.f32 %v254_v6, %v255_v1  ;;  %s283_s20 = scalar_select %p282_p1, 1, 0 }
  0x4d   : > { %s780_s23 = scalar_lea.vmem %s813_s2, %s224_s19  ;;  %v271_v8 = vmul.f32 %v270_v4, %v270_v4  ;;  %v235_v9 = vsub.f32 %v234_v5, %v233_v3 }
  0x4e   : > { %232 = vst.msk [vmem:[%s780_s23] sm:$0x1] %vm231_vm0, %v624_v0  ;;  %v257_v12 = vmul.f32 %v256_v7, %v256_v7  ;;  %v284_v32 = vstv %s283_s20 }
  0x4f   : > { %v272_v10 = vsel %vm258_vm1, %v271_v8, 0.0  ;;  %v236_v11 = vmul.f32 %v235_v9, %v235_v9  ;;  %vm285_vm8 = vcmp.eq.s32.totalorder %v284_v32, 1 }
  0x50   : > { %273 = vadd.xlane.f32.xlu1 %v272_v10  ;;  %v259_v14 = vsel %vm258_vm1, %v257_v12, 0.0 }
  0x51   : > { %v238_v13 = vsel %vm237_vm2, %v236_v11, 0.0 }
  0x52   : > { %239 = vadd.xlane.f32.xlu0 %v238_v13 }
  0x55   : > { %v287_v42 = vld [vmem:[%s780_s23] sm:$0x1] }
  0x56   : > { %260 = vadd.xlane.f32.xlu0 %v259_v14 }
  0xd9   : > { %v274_v16 = vpop.xlane.xlu1 %273 }
  0xda   : > { %vm277_vm5 = vcmp.eq.f32.partialorder %v274_v16, inf  ;;  %v280_v30 = vand.u32 2147483648, %v274_v16  ;;  %vm279_vm6 = vcmp.eq.f32.partialorder %v274_v16, 0.0 }
  0xdb   : > { %v240_v15 = vpop.xlane.xlu0 %239 }
  0xdc   : > { %482 = vrsqrt.f32 %v240_v15  ;;  %vm243_vm3 = vcmp.eq.f32.partialorder %v240_v15, inf  ;;  %v246_v20 = vand.u32 2147483648, %v240_v15  ;;  %vm245_vm4 = vcmp.eq.f32.partialorder %v240_v15, 0.0 }
  0xdd   : > { %484 = vrsqrt.f32 %v274_v16 }
  0xdf   : > { %v261_v17 = vpop.xlane.xlu0 %260 }
  0xe0   : > { %486 = vrsqrt.f32 %v261_v17  ;;  %vm264_vm7 = vcmp.eq.f32.partialorder %v261_v17, inf  ;;  %v267_v36 = vand.u32 2147483648, %v261_v17  ;;  %vm266_vm9 = vcmp.eq.f32.partialorder %v261_v17, 0.0 }
  0xe9   : > { %v483_v18 = vpop.eup %482 }
  0xea   : > { %v242_v19 = vmul.f32 %v483_v18, %v240_v15  ;;  %v485_v23 = vpop.eup %484 }
  0xeb   : > { %v276_v27 = vmul.f32 %v485_v23, %v274_v16 }
  0xec   : > { %v244_v21 = vsel %vm243_vm3, %v240_v15, %v242_v19 }
  0xed   : > { %v247_v22 = vsel %vm245_vm4, %v246_v20, %v244_v21  ;;  %v487_v25 = vpop.eup %486  ;;  %v278_v33 = vsel %vm277_vm5, %v274_v16, %v276_v27 }
  0xee   : > { %v248_v24 = vrot.slane %v247_v22, 4  ;;  %v263_v29 = vmul.f32 %v487_v25, %v261_v17  ;;  %v281_v37 = vsel %vm279_vm6, %v280_v30, %v278_v33 }
  0xef   : > { %v286_v41 = vsel %vm285_vm8, 0.0, %v281_v37 }
  0xf0   : > { %v249_v26 = vadd.f32 %v248_v24, %v247_v22  ;;  %v265_v35 = vsel %vm264_vm7, %v261_v17, %v263_v29 }
  0xf1   : > { %v268_v39 = vsel %vm266_vm9, %v267_v36, %v265_v35 }
  0xf2   : > { %v250_v28 = vrot.slane %v249_v26, 2 }
  0xf4   : > { %v251_v31 = vadd.f32 %v250_v28, %v249_v26 }
  0xf6   : > { %v252_v34 = vrot.slane %v251_v31, 1 }
  0xf8   : > { %v253_v38 = vadd.f32 %v252_v34, %v251_v31 }
  0xfa   : > { %v288_v40 = vsub.f32 %v253_v38, %v268_v39 }
  0xfc   : > { %v289_v43 = vadd.f32 %v288_v40, %v286_v41 }
  0xfe   : > { %v290_v44 = vadd.f32 %v289_v43, %v287_v42 }
 0x100   : > { %292 = vst.msk [vmem:[%s780_s23] sm:$0x1] %vm231_vm0, %v290_v44 }
 0x101 PF: > { %s18_s16 = sadd.s32 1, %s620_s16   ;;  %s828_s9 = smov %s596_s10 }
 0x102   : > { %p15_p10 = scmp.ge.s32.totalorder %s18_s16, 4   ;;  %s792_s10 = smov 0  }
 0x103   : > { %s829_s11 = smov %s604_s12  ;;  %s830_s12 = smov %s608_s13 }
 0x104   : > { %s831_s13 = smov %s707_s24  ;;  %s832_s14 = smov %s616_s15 }
 0x105   : > { %s833_s15 = smov %s835_s18  ;;  %17 = sbr.rel (!%p15_p10) target bundleno = 7 (0x7), region = 85 }
 0x10a   :  { %310 = vsyncpa [#allocation3], 1 }
 0x10b   :  { %312 = vsyncpa [#allocation3 + $0x1], 1 }
 0x10c   :  { %313 = vsyncpa [#allocation5], 1 }
 0x10d   :  { %315 = vsyncpa [#allocation5 + $0x1], 1 }

</bundles_post_ra>
